<compile_context>
chip_gen: v7x
topology: tpu7x:2x2x1
jax: 0.10.0
libtpu: 0.0.40
codegen_flags: <defaults>
</compile_context>

<pallas_src>
import functools

import jax
import jax.numpy as jnp
from jax.experimental import pallas as pl
from jax.experimental.pallas import tpu as pltpu


def fire_kernel(x_ref, m_ref, w1_ref, b1_ref, w2_ref, b2_ref,
                w3_ref, b3_ref, w4_ref, b4_ref, o_ref, *, Csq, Cexp, W):
    L = x_ref.shape[-1]          # lane-tile width (multiple of H*W)
    Cin = w1_ref.shape[1]

    x = x_ref[...]                                               # (Cin, L) f32
    w1 = w1_ref[...]                                             # (Csq, Cin), BN folded

    # ---- conv1 (1x1 squeeze, BN folded) + relu1 ----
    if Cin <= 8:
        # tiny contraction: unrolled VPU FMAs beat MXU push/pop latency
        sq = w1[:, 0:1] * x[0:1, :]
        for c in range(1, Cin):
            sq = sq + w1[:, c:c + 1] * x[c:c + 1, :]
    else:
        sq = jnp.dot(w1, x, preferred_element_type=jnp.float32)
    sq = jnp.maximum(sq + b1_ref[...], 0.0)                      # (Csq, L)

    # ---- conv2 (1x1 expand, BN folded) ----
    out1 = jnp.dot(w2_ref[...], sq, preferred_element_type=jnp.float32) + b2_ref[...]

    # precomputed 0/1 boundary masks (left / right / up / down), (1, L) each
    masks = m_ref[...]
    ml = masks[0:1, :]
    mr = masks[1:2, :]
    mu = masks[2:3, :]
    md = masks[3:4, :]

    # ---- conv3: depthwise (1,3) along W, padding (0,1), BN folded ----
    w3 = w3_ref[...]                                             # (Csq, 3)
    left = ml * pltpu.roll(sq, 1, axis=1)                        # x[:, w-1]
    right = mr * pltpu.roll(sq, L - 1, axis=1)                   # x[:, w+1]
    out2 = w3[:, 0:1] * left + w3[:, 1:2] * sq + w3[:, 2:3] * right + b3_ref[...]

    # ---- conv4: depthwise (3,1) along H, padding (1,0), BN folded ----
    w4 = w4_ref[...]                                             # (Csq, 3)
    up = mu * pltpu.roll(sq, W, axis=1)                          # x[h-1, :]
    down = md * pltpu.roll(sq, L - W, axis=1)                    # x[h+1, :]
    out3 = w4[:, 0:1] * up + w4[:, 1:2] * sq + w4[:, 2:3] * down + b4_ref[...]

    # ---- concat([out1, out2, out3], channel) + relu2 (sublane-aligned stores) ----
    o_ref[0:Cexp, :] = jnp.maximum(out1, 0.0).astype(o_ref.dtype)
    o_ref[Cexp:Cexp + Csq, :] = jnp.maximum(out2, 0.0).astype(o_ref.dtype)
    o_ref[Cexp + Csq:Cexp + 2 * Csq, :] = jnp.maximum(out3, 0.0).astype(o_ref.dtype)


def _fold_bn_into_conv(w, conv_bias, gamma, beta, mean, var, eps=1e-5):
    """Fold inference-mode BN into the conv: y = (w*s) @ x + ((b - m)*s + beta)."""
    scale = gamma / jnp.sqrt(var + eps)
    w_f = (w * scale[:, None]).astype(jnp.float32)
    b_f = ((conv_bias - mean) * scale + beta)[:, None].astype(jnp.float32)
    return w_f, b_f


def _boundary_masks(H, W, n_imgs):
    """(4, n_imgs*H*W) float 0/1 masks: rows = [left, right, up, down] validity."""
    idx = jnp.arange(H * W, dtype=jnp.int32)
    wpos = idx % W
    hpos = idx // W
    m = jnp.stack([
        (wpos != 0).astype(jnp.float32),          # has a left neighbor
        (wpos != W - 1).astype(jnp.float32),      # has a right neighbor
        (hpos != 0).astype(jnp.float32),          # has an up neighbor
        (hpos != H - 1).astype(jnp.float32),      # has a down neighbor
    ], axis=0)                                    # (4, HW)
    return jnp.tile(m, (1, n_imgs))               # (4, n_imgs*HW)


def fire_forward(x, p, out_dtype=jnp.float32, lane_target=1024):
    N, Cin, H, W = x.shape
    Csq = p['w1'].shape[0]
    Cexp = p['w2'].shape[0]
    Ctot = Cexp + 2 * Csq
    HW = H * W
    L = N * HW

    # Host-side BN folding (conv1/conv2 rows, conv3/conv4 taps).
    w1f, b1f = _fold_bn_into_conv(p['w1'], p['b1'], p['g1'], p['be1'], p['m1'], p['v1'])
    w2f, b2f = _fold_bn_into_conv(p['w2'], p['b2'], p['g2'], p['be2'], p['m2'], p['v2'])
    w3f, b3f = _fold_bn_into_conv(p['w3'], p['b3'], p['g3'], p['be3'], p['m3'], p['v3'])
    w4f, b4f = _fold_bn_into_conv(p['w4'], p['b4'], p['g4'], p['be4'], p['m4'], p['v4'])

    # NCHW -> (Cin, N*HW): channels on sublanes, batched spatial on lanes.
    x2 = jnp.transpose(x, (1, 0, 2, 3)).reshape(Cin, L).astype(jnp.float32)
    masks = _boundary_masks(H, W, N)

    # Lane tile: a multiple of HW (masks/rolls stay image-aligned), ~lane_target
    # lanes, dividing N*HW. Per-step VMEM (2 bufs * (Cin+4+Ctot) * Lt * 4B) stays
    # tiny, well within v7x's 64 MiB VMEM.
    nb = max(1, min(N, lane_target // HW)) if HW <= lane_target else 1
    while N % nb:
        nb -= 1
    Lt = nb * HW
    grid = (L // Lt,)

    def const_spec(shape):
        return pl.BlockSpec(shape, lambda j, _nd=len(shape): (0,) * _nd)

    kernel = functools.partial(fire_kernel, Csq=Csq, Cexp=Cexp, W=W)
    out = pl.pallas_call(
        kernel,
        out_shape=jax.ShapeDtypeStruct((Ctot, L), out_dtype),
        grid=grid,
        in_specs=[
            pl.BlockSpec((Cin, Lt), lambda j: (0, j)),
            pl.BlockSpec((4, Lt), lambda j: (0, j)),
            const_spec(w1f.shape), const_spec(b1f.shape),
            const_spec(w2f.shape), const_spec(b2f.shape),
            const_spec(w3f.shape), const_spec(b3f.shape),
            const_spec(w4f.shape), const_spec(b4f.shape),
        ],
        out_specs=pl.BlockSpec((Ctot, Lt), lambda j: (0, j)),
        compiler_params=pltpu.CompilerParams(dimension_semantics=("parallel",)),
    )(x2, masks, w1f, b1f, w2f, b2f, w3f, b3f, w4f, b4f)

    # (Ctot, N*HW) -> NCHW
    return out.reshape(Ctot, N, H, W).transpose(1, 0, 2, 3)


def ref_fire(x, p, eps=1e-5):
    """Pure-JAX reference using lax convolutions (inference-mode BN)."""
    Csq = p['w1'].shape[0]

    def bn(y, g, b, m, v):
        sc = (g / jnp.sqrt(v + eps))[None, :, None, None]
        return (y - m[None, :, None, None]) * sc + b[None, :, None, None]

    def conv(h, w, b, padding, groups=1):
        y = jax.lax.conv_general_dilated(
            h, w, window_strides=(1, 1), padding=padding,
            dimension_numbers=('NCHW', 'OIHW', 'NCHW'),
            feature_group_count=groups)
        return y + b[None, :, None, None]

    h = jax.nn.relu(bn(conv(x, p['w1'][:, :, None, None], p['b1'], 'VALID'),
                       p['g1'], p['be1'], p['m1'], p['v1']))
    out1 = bn(conv(h, p['w2'][:, :, None, None], p['b2'], 'VALID'),
              p['g2'], p['be2'], p['m2'], p['v2'])
    out2 = bn(conv(h, p['w3'][:, None, None, :], p['b3'], [(0, 0), (1, 1)], groups=Csq),
              p['g3'], p['be3'], p['m3'], p['v3'])
    out3 = bn(conv(h, p['w4'][:, None, :, None], p['b4'], [(1, 1), (0, 0)], groups=Csq),
              p['g4'], p['be4'], p['m4'], p['v4'])
    return jax.nn.relu(jnp.concatenate([out1, out2, out3], axis=1))


if __name__ == "__main__":
    inplanes, expand_planes = 4, 16
    squeeze_planes = expand_planes // 2       # matches module: squeeze = expand // 2
    N, H, W = 2, 16, 16

    key = jax.random.PRNGKey(0)
    ks = jax.random.split(key, 25)

    def nrm(k, shape, scale=0.1):
        return scale * jax.random.normal(k, shape, dtype=jnp.float32)

    def bn_params(k0, k1, k2, k3, c):
        return dict(
            g=1.0 + 0.1 * jax.random.normal(ks[k0], (c,), dtype=jnp.float32),
            be=nrm(ks[k1], (c,)),
            m=nrm(ks[k2], (c,)),
            v=0.5 + jax.random.uniform(ks[k3], (c,), dtype=jnp.float32),
        )

    bn1 = bn_params(2, 3, 4, 5, squeeze_planes)
    bn2 = bn_params(8, 9, 10, 11, expand_planes)
    bn3 = bn_params(14, 15, 16, 17, squeeze_planes)
    bn4 = bn_params(20, 21, 22, 23, squeeze_planes)

    params = {
        'w1': nrm(ks[0], (squeeze_planes, inplanes)),   'b1': nrm(ks[1], (squeeze_planes,)),
        'g1': bn1['g'], 'be1': bn1['be'], 'm1': bn1['m'], 'v1': bn1['v'],
        'w2': nrm(ks[6], (expand_planes, squeeze_planes)), 'b2': nrm(ks[7], (expand_planes,)),
        'g2': bn2['g'], 'be2': bn2['be'], 'm2': bn2['m'], 'v2': bn2['v'],
        'w3': nrm(ks[12], (squeeze_planes, 3)),         'b3': nrm(ks[13], (squeeze_planes,)),
        'g3': bn3['g'], 'be3': bn3['be'], 'm3': bn3['m'], 'v3': bn3['v'],
        'w4': nrm(ks[18], (squeeze_planes, 3)),         'b4': nrm(ks[19], (squeeze_planes,)),
        'g4': bn4['g'], 'be4': bn4['be'], 'm4': bn4['m'], 'v4': bn4['v'],
    }

    x = jax.random.normal(ks[24], (N, inplanes, H, W), dtype=jnp.float32)

    ref = ref_fire(x, params)

    # f32 path: exact-parity check.
    out = jax.block_until_ready(fire_forward(x, params))
    assert out.shape == (N, expand_planes + 2 * squeeze_planes, H, W), out.shape
    max_err = float(jnp.max(jnp.abs(out - ref)))
    assert jnp.allclose(out, ref, atol=1e-4, rtol=1e-4), f"max_err={max_err}"

    # bf16-output path (halves output HBM traffic in the mem-bound regime).
    out_bf16 = jax.block_until_ready(
        fire_forward(x, params, out_dtype=jnp.bfloat16)).astype(jnp.float32)
    max_err_bf16 = float(jnp.max(jnp.abs(out_bf16 - ref)))
    assert jnp.allclose(out_bf16, ref, atol=5e-2, rtol=5e-2), f"max_err_bf16={max_err_bf16}"

    print("KERNEL_OK")
</pallas_src>

<mosaic_0001>
module attributes {stable_mosaic.version = 11 : i64} {
  func.func @fire_kernel(%arg0: i32, %arg1: memref<4x512xf32, #tpu.memory_space<vmem>>, %arg2: memref<4x512xf32, #tpu.memory_space<vmem>>, %arg3: memref<8x4xf32, #tpu.memory_space<vmem>>, %arg4: memref<8x1xf32, #tpu.memory_space<vmem>>, %arg5: memref<16x8xf32, #tpu.memory_space<vmem>>, %arg6: memref<16x1xf32, #tpu.memory_space<vmem>>, %arg7: memref<8x3xf32, #tpu.memory_space<vmem>>, %arg8: memref<8x1xf32, #tpu.memory_space<vmem>>, %arg9: memref<8x3xf32, #tpu.memory_space<vmem>>, %arg10: memref<8x1xf32, #tpu.memory_space<vmem>>, %arg11: memref<32x512xf32, #tpu.memory_space<vmem>>) attributes {dimension_semantics = [#tpu.dimension_semantics<parallel>], iteration_bounds = array<i64: 1>, scalar_prefetch = 0 : i64, scratch_operands = 0 : i64, tpu.core_type = #tpu.core_type<tc>, window_params = [{transform_indices = @transform_0, window_bounds = array<i64: 4, 512>}, {transform_indices = @transform_1, window_bounds = array<i64: 4, 512>}, {pipeline_mode = #tpu.pipeline_mode<synchronous>, transform_indices = @transform_2, window_bounds = array<i64: 8, 4>}, {pipeline_mode = #tpu.pipeline_mode<synchronous>, transform_indices = @transform_3, window_bounds = array<i64: 8, 1>}, {pipeline_mode = #tpu.pipeline_mode<synchronous>, transform_indices = @transform_4, window_bounds = array<i64: 16, 8>}, {pipeline_mode = #tpu.pipeline_mode<synchronous>, transform_indices = @transform_5, window_bounds = array<i64: 16, 1>}, {pipeline_mode = #tpu.pipeline_mode<synchronous>, transform_indices = @transform_6, window_bounds = array<i64: 8, 3>}, {pipeline_mode = #tpu.pipeline_mode<synchronous>, transform_indices = @transform_7, window_bounds = array<i64: 8, 1>}, {pipeline_mode = #tpu.pipeline_mode<synchronous>, transform_indices = @transform_8, window_bounds = array<i64: 8, 3>}, {pipeline_mode = #tpu.pipeline_mode<synchronous>, transform_indices = @transform_9, window_bounds = array<i64: 8, 1>}, {transform_indices = @transform_10, window_bounds = array<i64: 32, 512>}]} {
    %c0 = arith.constant 0 : index
    %c0_0 = arith.constant 0 : index
    %0 = vector.load %arg1[%c0, %c0_0] : memref<4x512xf32, #tpu.memory_space<vmem>>, vector<4x512xf32>
    %c0_1 = arith.constant 0 : index
    %c0_2 = arith.constant 0 : index
    %1 = vector.load %arg3[%c0_1, %c0_2] : memref<8x4xf32, #tpu.memory_space<vmem>>, vector<8x4xf32>
    %2 = vector.extract_strided_slice %1 {offsets = [0, 0], sizes = [8, 1], strides = [1, 1]} : vector<8x4xf32> to vector<8x1xf32>
    %3 = vector.extract_strided_slice %0 {offsets = [0, 0], sizes = [1, 512], strides = [1, 1]} : vector<4x512xf32> to vector<1x512xf32>
    %4 = vector.broadcast %2 : vector<8x1xf32> to vector<8x512xf32>
    %5 = vector.broadcast %3 : vector<1x512xf32> to vector<8x512xf32>
    %6 = arith.mulf %4, %5 : vector<8x512xf32>
    %7 = vector.extract_strided_slice %1 {offsets = [0, 1], sizes = [8, 1], strides = [1, 1]} : vector<8x4xf32> to vector<8x1xf32>
    %8 = vector.extract_strided_slice %0 {offsets = [1, 0], sizes = [1, 512], strides = [1, 1]} : vector<4x512xf32> to vector<1x512xf32>
    %9 = vector.broadcast %7 : vector<8x1xf32> to vector<8x512xf32>
    %10 = vector.broadcast %8 : vector<1x512xf32> to vector<8x512xf32>
    %11 = arith.mulf %9, %10 : vector<8x512xf32>
    %12 = arith.addf %6, %11 : vector<8x512xf32>
    %13 = vector.extract_strided_slice %1 {offsets = [0, 2], sizes = [8, 1], strides = [1, 1]} : vector<8x4xf32> to vector<8x1xf32>
    %14 = vector.extract_strided_slice %0 {offsets = [2, 0], sizes = [1, 512], strides = [1, 1]} : vector<4x512xf32> to vector<1x512xf32>
    %15 = vector.broadcast %13 : vector<8x1xf32> to vector<8x512xf32>
    %16 = vector.broadcast %14 : vector<1x512xf32> to vector<8x512xf32>
    %17 = arith.mulf %15, %16 : vector<8x512xf32>
    %18 = arith.addf %12, %17 : vector<8x512xf32>
    %19 = vector.extract_strided_slice %1 {offsets = [0, 3], sizes = [8, 1], strides = [1, 1]} : vector<8x4xf32> to vector<8x1xf32>
    %20 = vector.extract_strided_slice %0 {offsets = [3, 0], sizes = [1, 512], strides = [1, 1]} : vector<4x512xf32> to vector<1x512xf32>
    %21 = vector.broadcast %19 : vector<8x1xf32> to vector<8x512xf32>
    %22 = vector.broadcast %20 : vector<1x512xf32> to vector<8x512xf32>
    %23 = arith.mulf %21, %22 : vector<8x512xf32>
    %24 = arith.addf %18, %23 : vector<8x512xf32>
    %c0_3 = arith.constant 0 : index
    %c0_4 = arith.constant 0 : index
    %25 = vector.load %arg4[%c0_3, %c0_4] : memref<8x1xf32, #tpu.memory_space<vmem>>, vector<8x1xf32>
    %26 = vector.broadcast %25 : vector<8x1xf32> to vector<8x512xf32>
    %27 = arith.addf %24, %26 : vector<8x512xf32>
    %cst = arith.constant 0.000000e+00 : f32
    %28 = vector.broadcast %cst : f32 to vector<8x512xf32>
    %29 = arith.maximumf %27, %28 : vector<8x512xf32>
    %c0_5 = arith.constant 0 : index
    %c0_6 = arith.constant 0 : index
    %30 = vector.load %arg5[%c0_5, %c0_6] : memref<16x8xf32, #tpu.memory_space<vmem>>, vector<16x8xf32>
    %cst_7 = arith.constant dense<0.000000e+00> : vector<16x512xf32>
    %31 = tpu.matmul %30, %29, %cst_7 {dimension_numbers = #tpu.dot_dimension_numbers<[1], [0], [0], [1], [0, 0, 1, 1], [], []>} : vector<16x8xf32>, vector<8x512xf32>, vector<16x512xf32> -> vector<16x512xf32>
    %c0_8 = arith.constant 0 : index
    %c0_9 = arith.constant 0 : index
    %32 = vector.load %arg6[%c0_8, %c0_9] : memref<16x1xf32, #tpu.memory_space<vmem>>, vector<16x1xf32>
    %33 = vector.broadcast %32 : vector<16x1xf32> to vector<16x512xf32>
    %34 = arith.addf %31, %33 : vector<16x512xf32>
    %c0_10 = arith.constant 0 : index
    %c0_11 = arith.constant 0 : index
    %35 = vector.load %arg2[%c0_10, %c0_11] : memref<4x512xf32, #tpu.memory_space<vmem>>, vector<4x512xf32>
    %36 = vector.extract_strided_slice %35 {offsets = [0, 0], sizes = [1, 512], strides = [1, 1]} : vector<4x512xf32> to vector<1x512xf32>
    %37 = vector.extract_strided_slice %35 {offsets = [1, 0], sizes = [1, 512], strides = [1, 1]} : vector<4x512xf32> to vector<1x512xf32>
    %38 = vector.extract_strided_slice %35 {offsets = [2, 0], sizes = [1, 512], strides = [1, 1]} : vector<4x512xf32> to vector<1x512xf32>
    %39 = vector.extract_strided_slice %35 {offsets = [3, 0], sizes = [1, 512], strides = [1, 1]} : vector<4x512xf32> to vector<1x512xf32>
    %c0_12 = arith.constant 0 : index
    %c0_13 = arith.constant 0 : index
    %40 = vector.load %arg7[%c0_12, %c0_13] : memref<8x3xf32, #tpu.memory_space<vmem>>, vector<8x3xf32>
    %c1_i32 = arith.constant 1 : i32
    %41 = tpu.dynamic_rotate %29 by %c1_i32 dim 1 : vector<8x512xf32>, i32 -> vector<8x512xf32>
    %42 = vector.broadcast %36 : vector<1x512xf32> to vector<8x512xf32>
    %43 = arith.mulf %42, %41 : vector<8x512xf32>
    %c511_i32 = arith.constant 511 : i32
    %44 = tpu.dynamic_rotate %29 by %c511_i32 dim 1 : vector<8x512xf32>, i32 -> vector<8x512xf32>
    %45 = vector.broadcast %37 : vector<1x512xf32> to vector<8x512xf32>
    %46 = arith.mulf %45, %44 : vector<8x512xf32>
    %47 = vector.extract_strided_slice %40 {offsets = [0, 0], sizes = [8, 1], strides = [1, 1]} : vector<8x3xf32> to vector<8x1xf32>
    %48 = vector.broadcast %47 : vector<8x1xf32> to vector<8x512xf32>
    %49 = arith.mulf %48, %43 : vector<8x512xf32>
    %50 = vector.extract_strided_slice %40 {offsets = [0, 1], sizes = [8, 1], strides = [1, 1]} : vector<8x3xf32> to vector<8x1xf32>
    %51 = vector.broadcast %50 : vector<8x1xf32> to vector<8x512xf32>
    %52 = arith.mulf %51, %29 : vector<8x512xf32>
    %53 = arith.addf %49, %52 : vector<8x512xf32>
    %54 = vector.extract_strided_slice %40 {offsets = [0, 2], sizes = [8, 1], strides = [1, 1]} : vector<8x3xf32> to vector<8x1xf32>
    %55 = vector.broadcast %54 : vector<8x1xf32> to vector<8x512xf32>
    %56 = arith.mulf %55, %46 : vector<8x512xf32>
    %57 = arith.addf %53, %56 : vector<8x512xf32>
    %c0_14 = arith.constant 0 : index
    %c0_15 = arith.constant 0 : index
    %58 = vector.load %arg8[%c0_14, %c0_15] : memref<8x1xf32, #tpu.memory_space<vmem>>, vector<8x1xf32>
    %59 = vector.broadcast %58 : vector<8x1xf32> to vector<8x512xf32>
    %60 = arith.addf %57, %59 : vector<8x512xf32>
    %c0_16 = arith.constant 0 : index
    %c0_17 = arith.constant 0 : index
    %61 = vector.load %arg9[%c0_16, %c0_17] : memref<8x3xf32, #tpu.memory_space<vmem>>, vector<8x3xf32>
    %c16_i32 = arith.constant 16 : i32
    %62 = tpu.dynamic_rotate %29 by %c16_i32 dim 1 : vector<8x512xf32>, i32 -> vector<8x512xf32>
    %63 = vector.broadcast %38 : vector<1x512xf32> to vector<8x512xf32>
    %64 = arith.mulf %63, %62 : vector<8x512xf32>
    %c496_i32 = arith.constant 496 : i32
    %65 = tpu.dynamic_rotate %29 by %c496_i32 dim 1 : vector<8x512xf32>, i32 -> vector<8x512xf32>
    %66 = vector.broadcast %39 : vector<1x512xf32> to vector<8x512xf32>
    %67 = arith.mulf %66, %65 : vector<8x512xf32>
    %68 = vector.extract_strided_slice %61 {offsets = [0, 0], sizes = [8, 1], strides = [1, 1]} : vector<8x3xf32> to vector<8x1xf32>
    %69 = vector.broadcast %68 : vector<8x1xf32> to vector<8x512xf32>
    %70 = arith.mulf %69, %64 : vector<8x512xf32>
    %71 = vector.extract_strided_slice %61 {offsets = [0, 1], sizes = [8, 1], strides = [1, 1]} : vector<8x3xf32> to vector<8x1xf32>
    %72 = vector.broadcast %71 : vector<8x1xf32> to vector<8x512xf32>
    %73 = arith.mulf %72, %29 : vector<8x512xf32>
    %74 = arith.addf %70, %73 : vector<8x512xf32>
    %75 = vector.extract_strided_slice %61 {offsets = [0, 2], sizes = [8, 1], strides = [1, 1]} : vector<8x3xf32> to vector<8x1xf32>
    %76 = vector.broadcast %75 : vector<8x1xf32> to vector<8x512xf32>
    %77 = arith.mulf %76, %67 : vector<8x512xf32>
    %78 = arith.addf %74, %77 : vector<8x512xf32>
    %c0_18 = arith.constant 0 : index
    %c0_19 = arith.constant 0 : index
    %79 = vector.load %arg10[%c0_18, %c0_19] : memref<8x1xf32, #tpu.memory_space<vmem>>, vector<8x1xf32>
    %80 = vector.broadcast %79 : vector<8x1xf32> to vector<8x512xf32>
    %81 = arith.addf %78, %80 : vector<8x512xf32>
    %cst_20 = arith.constant 0.000000e+00 : f32
    %82 = vector.broadcast %cst_20 : f32 to vector<16x512xf32>
    %83 = arith.maximumf %34, %82 : vector<16x512xf32>
    %c0_21 = arith.constant 0 : index
    %c0_22 = arith.constant 0 : index
    %84 = vector.load %arg11[%c0_21, %c0_22] : memref<32x512xf32, #tpu.memory_space<vmem>>, vector<16x512xf32>
    tpu.vector_store %arg11[%c0_21, %c0_22], %83 {strides = array<i32>} : memref<32x512xf32, #tpu.memory_space<vmem>>, vector<16x512xf32>,
    %cst_23 = arith.constant 0.000000e+00 : f32
    %85 = vector.broadcast %cst_23 : f32 to vector<8x512xf32>
    %86 = arith.maximumf %60, %85 : vector<8x512xf32>
    %c16 = arith.constant 16 : index
    %c0_24 = arith.constant 0 : index
    %87 = vector.load %arg11[%c16, %c0_24] : memref<32x512xf32, #tpu.memory_space<vmem>>, vector<8x512xf32>
    tpu.vector_store %arg11[%c16, %c0_24], %86 {strides = array<i32>} : memref<32x512xf32, #tpu.memory_space<vmem>>, vector<8x512xf32>,
    %cst_25 = arith.constant 0.000000e+00 : f32
    %88 = vector.broadcast %cst_25 : f32 to vector<8x512xf32>
    %89 = arith.maximumf %81, %88 : vector<8x512xf32>
    %c24 = arith.constant 24 : index
    %c0_26 = arith.constant 0 : index
    %90 = vector.load %arg11[%c24, %c0_26] : memref<32x512xf32, #tpu.memory_space<vmem>>, vector<8x512xf32>
    tpu.vector_store %arg11[%c24, %c0_26], %89 {strides = array<i32>} : memref<32x512xf32, #tpu.memory_space<vmem>>, vector<8x512xf32>,
    return
  }
  func.func @transform_0(%arg0: i32) -> (i32, i32) {
    %c0_i32 = arith.constant 0 : i32
    %c0_i32_0 = arith.constant 0 : i32
    return %c0_i32, %arg0 : i32, i32
  }
  func.func @transform_1(%arg0: i32) -> (i32, i32) {
    %c0_i32 = arith.constant 0 : i32
    %c0_i32_0 = arith.constant 0 : i32
    return %c0_i32, %arg0 : i32, i32
  }
  func.func @transform_2(%arg0: i32) -> (i32, i32) {
    %c0_i32 = arith.constant 0 : i32
    %c0_i32_0 = arith.constant 0 : i32
    %c0_i32_1 = arith.constant 0 : i32
    return %c0_i32, %c0_i32_0 : i32, i32
  }
  func.func @transform_3(%arg0: i32) -> (i32, i32) {
    %c0_i32 = arith.constant 0 : i32
    %c0_i32_0 = arith.constant 0 : i32
    %c0_i32_1 = arith.constant 0 : i32
    return %c0_i32, %c0_i32_0 : i32, i32
  }
  func.func @transform_4(%arg0: i32) -> (i32, i32) {
    %c0_i32 = arith.constant 0 : i32
    %c0_i32_0 = arith.constant 0 : i32
    %c0_i32_1 = arith.constant 0 : i32
    return %c0_i32, %c0_i32_0 : i32, i32
  }
  func.func @transform_5(%arg0: i32) -> (i32, i32) {
    %c0_i32 = arith.constant 0 : i32
    %c0_i32_0 = arith.constant 0 : i32
    %c0_i32_1 = arith.constant 0 : i32
    return %c0_i32, %c0_i32_0 : i32, i32
  }
  func.func @transform_6(%arg0: i32) -> (i32, i32) {
    %c0_i32 = arith.constant 0 : i32
    %c0_i32_0 = arith.constant 0 : i32
    %c0_i32_1 = arith.constant 0 : i32
    return %c0_i32, %c0_i32_0 : i32, i32
  }
  func.func @transform_7(%arg0: i32) -> (i32, i32) {
    %c0_i32 = arith.constant 0 : i32
    %c0_i32_0 = arith.constant 0 : i32
    %c0_i32_1 = arith.constant 0 : i32
    return %c0_i32, %c0_i32_0 : i32, i32
  }
  func.func @transform_8(%arg0: i32) -> (i32, i32) {
    %c0_i32 = arith.constant 0 : i32
    %c0_i32_0 = arith.constant 0 : i32
    %c0_i32_1 = arith.constant 0 : i32
    return %c0_i32, %c0_i32_0 : i32, i32
  }
  func.func @transform_9(%arg0: i32) -> (i32, i32) {
    %c0_i32 = arith.constant 0 : i32
    %c0_i32_0 = arith.constant 0 : i32
    %c0_i32_1 = arith.constant 0 : i32
    return %c0_i32, %c0_i32_0 : i32, i32
  }
  func.func @transform_10(%arg0: i32) -> (i32, i32) {
    %c0_i32 = arith.constant 0 : i32
    %c0_i32_0 = arith.constant 0 : i32
    return %c0_i32, %arg0 : i32, i32
  }
}

</mosaic_0001>

<bundles_post_ra>
// kernel: tpu_custom_call.1
= control target key start
LH: loop header
LB: loop body
LE: loop exit
PB: predicated region body
PF: predicated region fallthrough
CT: control target
= control target key end

     0   :  { %v823_v1 = vmov 0   ;;  %v824_v2 = vmov 2   ;;  %s1180_s0 = inlined_call_operand.vmem [shape: f32[4,512], index: 0, kind: input, shape index: {}]   ;;  %s1181_s1 = inlined_call_operand.vmem [shape: f32[4,512], index: 1, kind: input, shape index: {}]   ;;  %s1182_s2 = inlined_call_operand.vmem [shape: f32[8,4], index: 2, kind: input, shape index: {}]   ;;  %s1183_s3 = inlined_call_operand.vmem [shape: f32[8,1], index: 3, kind: input, shape index: {}]   ;;  %s1184_s4 = inlined_call_operand.vmem [shape: f32[16,8], index: 4, kind: input, shape index: {}]   ;;  %s1185_s5 = inlined_call_operand.vmem [shape: f32[16,1], index: 5, kind: input, shape index: {}]   ;;  %s1186_s6 = inlined_call_operand.vmem [shape: f32[8,3], index: 6, kind: input, shape index: {}]   ;;  %s1187_s7 = inlined_call_operand.vmem [shape: f32[8,1], index: 7, kind: input, shape index: {}]   ;;  %s1188_s8 = inlined_call_operand.vmem [shape: f32[8,3], index: 8, kind: input, shape index: {}]   ;;  %s1189_s9 = inlined_call_operand.vmem [shape: f32[8,1], index: 9, kind: input, shape index: {}]   ;;  %s1190_s10 = inlined_call_operand.hbm [shape: f32[32,512], index: 10, kind: output, shape index: {}]  }
   0x1   :  { %v38_v0 = vld [vmem:[%s1182_s2] sm:$0xff]  ;;  %789 = vset.pattern.permute.xlu0 %v823_v1  ;;  %791 = vset.pattern.permute.xlu1 %v824_v2 }
   0x2   :  { %41 = vperm.xlu0 %789, %v38_v0   ;;  %135 = vperm.xlu1 %791, %v38_v0  }
   0x3   :  { %15 = vsyncpa [#allocation3], 0  ;;  %v825_v3 = vmov 1   ;;  %v826_v4 = vmov 3   ;;  %v575_v5 = vld [vmem:[%s1188_s8] sm:$0xff]  ;;  %v827_v9 = vmov 0.0   ;;  %v46_v12 = vlaneseq }
   0x4   :  { %v230_v6 = vld [vmem:[%s1183_s3] sm:$0xff]  ;;  %329 = vmatprep.mubr.f32.mxu0 %v827_v9  ;;  %406 = vmatprep.mubr.f32.mxu1 %v827_v9  ;;  %v247_v10 = vld [vmem:[%s1185_s5 + $0x8] sm:$0xff]  ;;  %vm258_vm0 = vcmask 64512   ;;  %s828_s26 = smov 1   ;;  %s829_s29 = smov 16  }
   0x5   :  { %v421_v7 = vld [vmem:[%s1186_s6] sm:$0xff]  ;;  %v47_v13 = vshrl.u32 %v46_v12, 7  ;;  %v37_v17 = vld [vmem:[%s1180_s0 + $0x8] sm:$0xff]  ;;  %s830_s30 = smov 127  }
   0x6   :  { %790 = vset.pattern.permute.xlu0 %v825_v3  ;;  %792 = vset.pattern.permute.xlu1 %v826_v4  ;;  %v246_v8 = vld [vmem:[%s1185_s5] sm:$0xff] }
   0x7   :  { %87 = vperm.xlu0 %790, %v38_v0   ;;  %183 = vperm.xlu1 %792, %v38_v0   ;;  %v565_v11 = vld [vmem:[%s1187_s7] sm:$0xff]  ;;  %v914_v14 = vsub.s32 0, %v47_v13  ;;  %v916_v15 = vsub.s32 4, %v47_v13  ;;  %v924_v18 = vsub.s32 2, %v47_v13  ;;  %v926_v19 = vsub.s32 6, %v47_v13 }
   0x8   :  { %v36_v16 = vld [vmem:[%s1180_s0] sm:$0xff]  ;;  %v928_v20 = vsub.s32 1, %v47_v13  ;;  %v930_v21 = vsub.s32 5, %v47_v13  ;;  %v932_v22 = vsub.s32 3, %v47_v13  ;;  %v934_v23 = vsub.s32 7, %v47_v13 }
   0x9   :  { %v49_v24 = vrot.slane %v36_v16, %v914_v14  ;;  %v53_v25 = vrot.slane %v36_v16, %v916_v15  ;;  %v57_v26 = vrot.slane %v37_v17, %v914_v14  ;;  %v61_v27 = vrot.slane %v37_v17, %v916_v15 }
   0xa   :  { %v141_v28 = vrot.slane %v36_v16, %v924_v18  ;;  %v145_v29 = vrot.slane %v36_v16, %v926_v19  ;;  %v149_v30 = vrot.slane %v37_v17, %v924_v18  ;;  %v153_v31 = vrot.slane %v37_v17, %v926_v19 }
   0xb   :  { %692 = vperm.xlu0 %790, %v575_v5   ;;  %793 = vset.pattern.permute.xlu1 %v823_v1  ;;  %v93_v32 = vrot.slane %v36_v16, %v928_v20  ;;  %v97_v33 = vrot.slane %v36_v16, %v930_v21  ;;  %v101_v34 = vrot.slane %v37_v17, %v928_v20 }
   0xc   :  { %233 = vperm.xlu1 %793, %v230_v6   ;;  %v105_v35 = vrot.slane %v37_v17, %v930_v21  ;;  %v189_v36 = vrot.slane %v36_v16, %v932_v22  ;;  %v193_v37 = vrot.slane %v36_v16, %v934_v23  ;;  %v197_v38 = vrot.slane %v37_v17, %v932_v22 }
   0xd   :  { %v201_v39 = vrot.slane %v37_v17, %v934_v23  ;;  %v69_v41 = vrot.slane %v49_v24, %v914_v14  ;;  %v73_v42 = vrot.slane %v53_v25, %v914_v14  ;;  %v77_v43 = vrot.slane %v57_v26, %v914_v14 }
   0xe   :  { %v81_v44 = vrot.slane %v61_v27, %v914_v14  ;;  %v161_v46 = vrot.slane %v141_v28, %v924_v18  ;;  %v165_v47 = vrot.slane %v145_v29, %v924_v18  ;;  %v169_v48 = vrot.slane %v149_v30, %v924_v18 }
   0xf   :  { %796 = vset.pattern.permute.xlu0 %v823_v1  ;;  %v173_v49 = vrot.slane %v153_v31, %v924_v18  ;;  %v113_v50 = vrot.slane %v93_v32, %v928_v20  ;;  %v117_v51 = vrot.slane %v97_v33, %v928_v20  ;;  %v121_v52 = vrot.slane %v101_v34, %v928_v20 }
  0x10   :  { %794 = vset.pattern.permute.xlu1 %v825_v3  ;;  %534 = vperm.xlu0 %796, %v421_v7   ;;  %v125_v53 = vrot.slane %v105_v35, %v928_v20  ;;  %v209_v54 = vrot.slane %v189_v36, %v932_v22  ;;  %v213_v55 = vrot.slane %v193_v37, %v932_v22 }
  0x11   :  { %542 = vperm.xlu1 %794, %v421_v7   ;;  %v217_v56 = vrot.slane %v197_v38, %v932_v22  ;;  %v221_v57 = vrot.slane %v201_v39, %v932_v22 }
  0x14   :  { %250 = vperm.xlu0 %796, %v246_v8  }
  0x15   :  { %795 = vset.pattern.permute.xlu1 %v823_v1 }
  0x16   :  { %684 = vperm.xlu1 %795, %v575_v5  }
  0x1a   :  { %797 = vset.pattern.permute.xlu1 %v824_v2 }
  0x1b   :  { %554 = vperm.xlu1 %797, %v421_v7  }
  0x1f   :  { %704 = vperm.xlu1 %797, %v575_v5  }
  0x23   :  { %798 = vset.pattern.permute.xlu1 %v823_v1 }
  0x24   :  { %255 = vperm.xlu1 %798, %v247_v10  }
  0x28   :  { %568 = vperm.xlu1 %798, %v565_v11  }
  0x81   :  { %v42_v40 = vpop.permute.xlu0 %41  ;;  %v136_v45 = vpop.permute.xlu1 %135 }
  0x82   :  { %v82_v58 = vmul.f32 %v69_v41, %v42_v40  ;;  %v83_v59 = vmul.f32 %v73_v42, %v42_v40  ;;  %v84_v60 = vmul.f32 %v77_v43, %v42_v40  ;;  %v85_v61 = vmul.f32 %v81_v44, %v42_v40  ;;  %v244_v43 = vld [vmem:[%s1184_s4] sm:$0xff]  ;;  %v245_v44 = vld [vmem:[%s1184_s4 + $0x8] sm:$0xff]  ;;  %s831_s4 = smov 112  }
  0x83   :  { %v174_v62 = vmul.f32 %v161_v46, %v136_v45  ;;  %v175_v63 = vmul.f32 %v165_v47, %v136_v45  ;;  %v176_v0 = vmul.f32 %v169_v48, %v136_v45  ;;  %v177_v1 = vmul.f32 %v173_v49, %v136_v45 }
  0x86   :  { %v88_v2 = vpop.permute.xlu0 %87  ;;  %v184_v3 = vpop.permute.xlu1 %183 }
  0x87   :  { %v126_v4 = vmul.f32 %v113_v50, %v88_v2  ;;  %v127_v5 = vmul.f32 %v117_v51, %v88_v2  ;;  %v128_v6 = vmul.f32 %v121_v52, %v88_v2  ;;  %v129_v7 = vmul.f32 %v125_v53, %v88_v2 }
  0x88   :  { %v222_v8 = vmul.f32 %v209_v54, %v184_v3  ;;  %v223_v10 = vmul.f32 %v213_v55, %v184_v3  ;;  %v224_v11 = vmul.f32 %v217_v56, %v184_v3  ;;  %v225_v13 = vmul.f32 %v221_v57, %v184_v3  ;;  %v1026_v56 = vld [vmem:[%s1181_s1] sm:$0xff] }
  0x89   :  { %v130_v16 = vadd.f32 %v126_v4, %v82_v58  ;;  %v131_v17 = vadd.f32 %v127_v5, %v83_v59  ;;  %v132_v24 = vadd.f32 %v128_v6, %v84_v60  ;;  %v133_v25 = vadd.f32 %v129_v7, %v85_v61  ;;  %v1036_v60 = vld [vmem:[%s1181_s1 + $0x8] sm:$0xff]  ;;  %s832_s1 = smov [#allocation2]  }
  0x8a   :  { %v1015_v49 = vpop.permute.xlu0 %692  ;;  %v1029_v58 = vand.u32 127, %v46_v12  ;;  %v442_v59 = vrot.slane %v1026_v56, %v914_v14  ;;  %v495_v4 = vrot.slane %v1026_v56, %v928_v20  ;;  %s762_s16 = sshll.u32 %s832_s1, 4  ;;  %s763_s16 = int_to_ptr.vmem [resolvable:$true] %s762_s16 }
  0x8b   :  { %v178_v26 = vadd.f32 %v174_v62, %v130_v16  ;;  %v179_v27 = vadd.f32 %v175_v63, %v131_v17  ;;  %v180_v28 = vadd.f32 %v176_v0, %v132_v24  ;;  %v181_v29 = vadd.f32 %v177_v1, %v133_v25  ;;  %v234_v30 = vpop.permute.xlu1 %233  ;;  %s799_s17 = scalar_lea.vmem %s763_s16, 2048  ;;  %p804_p1 = scmp.lt.s32.totalorder %s763_s16, %s763_s16 }
  0x8c   :  { %v446_v62 = vrot.slane %v1026_v56, %v916_v15  ;;  %v450_v63 = vrot.slane %v1036_v60, %v914_v14  ;;  %vm432_vm1 = vcmp.lt.s32.totalorder %v1029_v58, 1  ;;  %v462_v12 = vrot.slane %v442_v59, %v914_v14  ;;  %p800_p0 = scmp.ne.s32.totalorder %s763_s16, %s799_s17  ;;  %p805_p2 = scmp.lt.s32.totalorder %s799_s17, %s799_s17 }
  0x8d   :  { %v226_v31 = vadd.f32 %v222_v8, %v178_v26  ;;  %v227_v32 = vadd.f32 %v223_v10, %v179_v27  ;;  %v228_v33 = vadd.f32 %v224_v11, %v180_v28  ;;  %v229_v34 = vadd.f32 %v225_v13, %v181_v29 }
  0x8e   :  { %v454_v1 = vrot.slane %v1036_v60, %v916_v15  ;;  %v466_v5 = vrot.slane %v446_v62, %v914_v14  ;;  %v470_v6 = vrot.slane %v450_v63, %v914_v14  ;;  %v499_v17 = vrot.slane %v1026_v56, %v930_v21  ;;  %p806_p3 = por %p805_p2, %p804_p1 }
  0x8f   :  { %v236_v35 = vadd.f32 %v234_v30, %v226_v31  ;;  %v237_v36 = vadd.f32 %v234_v30, %v227_v32  ;;  %v238_v37 = vadd.f32 %v234_v30, %v228_v33  ;;  %v239_v38 = vadd.f32 %v234_v30, %v229_v34  ;;  %v535_v51 = vpop.permute.xlu0 %534 }
  0x90   :  { %v1007_v45 = vpop.permute.xlu1 %542  ;;  %v474_v11 = vrot.slane %v454_v1, %v914_v14  ;;  %vm487_vm2 = vcmp.lt.s32.totalorder %v1029_v58, 127  ;;  %v515_v24 = vrot.slane %v495_v4, %v928_v20  ;;  %v503_v25 = vrot.slane %v1036_v60, %v928_v20  ;;  %p807_p4 = pnand %p806_p3, %p800_p0 }
  0x91   :  { %v968_v39 = vmax.f32 %v236_v35, 0.0  ;;  %v970_v40 = vmax.f32 %v237_v36, 0.0  ;;  %v972_v41 = vmax.f32 %v239_v38, 0.0  ;;  %v974_v42 = vmax.f32 %v238_v37, 0.0 }
  0x92   :  { %v507_v26 = vrot.slane %v1036_v60, %v930_v21  ;;  %v519_v33 = vrot.slane %v499_v17, %v928_v20  ;;  %v523_v36 = vrot.slane %v503_v25, %v928_v20  ;;  %v600_v25 = vrot.slane %v1036_v60, %v924_v18 }
  0x93   :  { %342 = vmatprep.subr.mxu1 %v972_v41  ;;  %424 = vrot.lane.b32.xlu1 %v970_v40, %s828_s26  ;;  %v1021_v53 = vpop.permute.xlu0 %250  ;;  %v545_v34 = vmul.f32 %v1007_v45, %v968_v39  ;;  %v546_v21 = vmul.f32 %v1007_v45, %v970_v40  ;;  %vm584_vm3 = vcmp.lt.s32.totalorder %v1029_v58, 16  ;;  %vm637_vm4 = vcmp.lt.s32.totalorder %v1029_v58, 112 }
  0x94   :  { %265 = vmatprep.subr.mxu0 %v970_v40  ;;  %422 = vrot.lane.b32.xlu0 %v968_v39, %s828_s26  ;;  %v527_v37 = vrot.slane %v507_v26, %v928_v20  ;;  %v696_v58 = vmul.f32 %v1015_v49, %v970_v40 }
  0x95   :  { %266 = vmatpush1.msra.mxu0 %v968_v39  ;;  %343 = vmatpush1.msra.mxu1 %v974_v42  ;;  %v1009_v46 = vpop.permute.xlu1 %684 }
  0x96   :  { %773 = vmatmul.mubr.msk.f32.vlgmr.msra.gmra.mrb[0].mxu0 %vm258_vm0, %v244_v43  ;;  %775 = vmatmul.mubr.msk.f32.vlgmr.msra.gmra.mrb[0].mxu1 %vm258_vm0, %v244_v43 }
  0x97   :  { %335 = vmatprep.mubr.f32.mxu0 %v827_v9  ;;  %428 = vrot.lane.b32.xlu1 %v972_v41, %s828_s26 }
  0x98   :  { %412 = vmatprep.mubr.f32.mxu1 %v827_v9  ;;  %426 = vrot.lane.b32.xlu0 %v974_v42, %s828_s26  ;;  %v715_v9 = vld [vmem:[%s1189_s9] sm:$0xff] }
  0x9a   :  { %774 = vmatmul.mubr.msk.f32.gmra.mrb[2].mxu0 %vm258_vm0, %v245_v44  ;;  %776 = vmatmul.mubr.msk.f32.gmra.mrb[2].mxu1 %vm258_vm0, %v245_v44  ;;  %v1011_v47 = vpop.permute.xlu1 %554 }
  0x9b   :  { %578 = vrot.lane.b32.xlu1 %v970_v40, %s829_s29 }
  0x9c   :  { %576 = vrot.lane.b32.xlu0 %v968_v39, %s829_s29 }
  0x9e   :  { %v1013_v48 = vpop.permute.xlu1 %704 }
  0x9f   :  { %582 = vrot.lane.b32.xlu1 %v972_v41, %s829_s29 }
  0xa0   :  { %580 = vrot.lane.b32.xlu0 %v974_v42, %s829_s29 }
  0xa3   :  { %479 = vrot.lane.b32.xlu1 %v968_v39, %s830_s30  ;;  %v1017_v50 = vpop.permute.xlu1 %255 }
  0xa4   :  { %481 = vrot.lane.b32.xlu0 %v970_v40, %s830_s30 }
  0xa7   :  { %483 = vrot.lane.b32.xlu1 %v974_v42, %s830_s30  ;;  %v1019_v52 = vpop.permute.xlu1 %568 }
  0xa8   :  { %485 = vrot.lane.b32.xlu0 %v972_v41, %s830_s30 }
  0xab   :  { %631 = vrot.lane.b32.xlu1 %v970_v40, %s831_s4 }
  0xac   :  { %629 = vrot.lane.b32.xlu0 %v968_v39, %s831_s4 }
  0xaf   :  { %635 = vrot.lane.b32.xlu1 %v972_v41, %s831_s4 }
  0xb0   :  { %633 = vrot.lane.b32.xlu0 %v974_v42, %s831_s4 }
  0xb4   :  { %718 = vperm.xlu0 %796, %v715_v9  }
 0x105   :  { %v425_v54 = vpop.permute.xlu1 %424 }
 0x106   :  { %v423_v55 = vpop.permute.xlu0 %422 }
 0x107   :  { %v435_v8 = vsel %vm432_vm1, %v423_v55, %v425_v54 }
 0x108   :  { %v476_v27 = vmul.f32 %v466_v5, %v435_v8 }
 0x109   :  { %v429_v57 = vpop.permute.xlu1 %428 }
 0x10a   :  { %v427_v61 = vpop.permute.xlu0 %426  ;;  %v436_v3 = vsel %vm432_vm1, %v429_v57, %v423_v55  ;;  %v538_v38 = vmul.f32 %v535_v51, %v476_v27  ;;  %v604_v27 = vrot.slane %v1036_v60, %v926_v19 }
 0x10b   :  { %v475_v10 = vmul.f32 %v462_v12, %v436_v3  ;;  %v434_v13 = vsel %vm432_vm1, %v425_v54, %v427_v61  ;;  %v433_v15 = vsel %vm432_vm1, %v427_v61, %v429_v57  ;;  %v547_v61 = vmul.f32 %v1007_v45, %v974_v42 }
 0x10c   :  { %v477_v28 = vmul.f32 %v470_v6, %v434_v13  ;;  %v478_v30 = vmul.f32 %v474_v11, %v433_v15  ;;  %v548_v12 = vmul.f32 %v1007_v45, %v972_v41  ;;  %v550_v4 = vadd.f32 %v546_v21, %v538_v38 }
 0x10d   :  { %v1042_v0 = vpop.permute.xlu1 %578  ;;  %v537_v29 = vmul.f32 %v535_v51, %v475_v10  ;;  %v592_v45 = vrot.slane %v1026_v56, %v924_v18  ;;  %v624_v38 = vrot.slane %v604_v27, %v924_v18 }
 0x10e   :  { %v1048_v2 = vpop.permute.xlu0 %576  ;;  %v539_v43 = vmul.f32 %v535_v51, %v477_v28  ;;  %v540_v54 = vmul.f32 %v535_v51, %v478_v30  ;;  %v645_v30 = vrot.slane %v1026_v56, %v932_v22 }
 0x10f   :  { %v549_v9 = vadd.f32 %v545_v34, %v537_v29  ;;  %v653_v34 = vrot.slane %v1036_v60, %v932_v22 }
 0x110   :  { %v551_v5 = vadd.f32 %v547_v61, %v539_v43  ;;  %v552_v8 = vadd.f32 %v548_v12, %v540_v54  ;;  %v665_v54 = vrot.slane %v645_v30, %v932_v22 }
 0x111   :  { %v1054_v7 = vpop.permute.xlu1 %582 }
 0x112   :  { %v1057_v16 = vpop.permute.xlu0 %580 }
 0x115   :  { %v480_v14 = vpop.permute.xlu1 %479 }
 0x116   :  { %v482_v31 = vpop.permute.xlu0 %481 }
 0x117   :  { %v490_v32 = vsel %vm487_vm2, %v480_v14, %v482_v31 }
 0x118   :  { %v528_v35 = vmul.f32 %v515_v24, %v490_v32  ;;  %v596_v24 = vrot.slane %v1026_v56, %v926_v19  ;;  %v649_v19 = vrot.slane %v1026_v56, %v934_v23  ;;  %v588_v56 = vsel %vm584_vm3, %v1054_v7, %v1048_v2 }
 0x119   :  { %v484_v44 = vpop.permute.xlu1 %483 }
 0x11a   :  { %v557_v55 = vmul.f32 %v1011_v47, %v528_v35  ;;  %v489_v57 = vsel %vm487_vm2, %v482_v31, %v484_v44  ;;  %v486_v59 = vpop.permute.xlu0 %485  ;;  %v657_v31 = vrot.slane %v1036_v60, %v934_v23  ;;  %v616_v35 = vrot.slane %v596_v24, %v924_v18 }
 0x11b   :  { %v529_v62 = vmul.f32 %v519_v33, %v489_v57  ;;  %v488_v20 = vsel %vm487_vm2, %v484_v44, %v486_v59  ;;  %v491_v63 = vsel %vm487_vm2, %v486_v59, %v480_v14  ;;  %v587_v23 = vsel %vm584_vm3, %v1048_v2, %v1042_v0 }
 0x11c   :  { %v561_v51 = vadd.f32 %v557_v55, %v549_v9  ;;  %v530_v1 = vmul.f32 %v523_v36, %v488_v20  ;;  %v531_v3 = vmul.f32 %v527_v37, %v491_v63  ;;  %v612_v36 = vrot.slane %v592_v45, %v924_v18 }
 0x11d   :  { %v558_v6 = vmul.f32 %v1011_v47, %v529_v62  ;;  %v632_v15 = vpop.permute.xlu1 %631  ;;  %v620_v37 = vrot.slane %v600_v25, %v924_v18  ;;  %v585_v18 = vsel %vm584_vm3, %v1057_v16, %v1054_v7  ;;  %v586_v60 = vsel %vm584_vm3, %v1042_v0, %v1057_v16 }
 0x11e   :  { %v571_v10 = vadd.f32 %v1019_v52, %v561_v51  ;;  %v559_v11 = vmul.f32 %v1011_v47, %v530_v1  ;;  %v560_v13 = vmul.f32 %v1011_v47, %v531_v3  ;;  %v630_v17 = vpop.permute.xlu0 %629  ;;  %v677_v55 = vrot.slane %v657_v31, %v932_v22 }
 0x11f   :  { %v562_v26 = vadd.f32 %v558_v6, %v550_v4  ;;  %v669_v57 = vrot.slane %v649_v19, %v932_v22  ;;  %v673_v2 = vrot.slane %v653_v34, %v932_v22  ;;  %v640_v59 = vsel %vm637_vm4, %v630_v17, %v632_v15 }
 0x120   :  { %v741_v28 = vmax.f32 %v571_v10, 0.0  ;;  %v563_v14 = vadd.f32 %v559_v11, %v551_v5  ;;  %v564_v29 = vadd.f32 %v560_v13, %v552_v8  ;;  %v626_v61 = vmul.f32 %v616_v35, %v587_v23 }
 0x121   :  { %v572_v47 = vadd.f32 %v1019_v52, %v562_v26  ;;  %v625_v62 = vmul.f32 %v612_v36, %v588_v56  ;;  %v627_v20 = vmul.f32 %v620_v37, %v586_v60  ;;  %v628_v63 = vmul.f32 %v624_v38, %v585_v18 }
 0x122   :  { %745 = vst [vmem:[#allocation2 + $0x40] sm:$0xff] %v741_v28  ;;  %v573_v32 = vadd.f32 %v1019_v52, %v563_v14  ;;  %v574_v33 = vadd.f32 %v1019_v52, %v564_v29  ;;  %v636_v52 = vpop.permute.xlu1 %635  ;;  %v634_v9 = vpop.permute.xlu0 %633  ;;  %v678_v12 = vmul.f32 %v665_v54, %v640_v59  ;;  %v688_v3 = vmul.f32 %v1009_v46, %v626_v61 }
 0x123   :  { %v742_v21 = vmax.f32 %v572_v47, 0.0  ;;  %v641_v7 = vsel %vm637_vm4, %v636_v52, %v630_v17  ;;  %v638_v0 = vsel %vm637_vm4, %v634_v9, %v636_v52  ;;  %v639_v16 = vsel %vm637_vm4, %v632_v15, %v634_v9 }
 0x124   :  { %v743_v43 = vmax.f32 %v573_v32, 0.0  ;;  %v744_v44 = vmax.f32 %v574_v33, 0.0  ;;  %v681_v51 = vmul.f32 %v677_v55, %v641_v7  ;;  %v679_v1 = vmul.f32 %v669_v57, %v639_v16 }
 0x125   :  { %746 = vst [vmem:[#allocation2 + $0x48] sm:$0xff] %v742_v21  ;;  %v680_v22 = vmul.f32 %v673_v2, %v638_v0  ;;  %v687_v4 = vmul.f32 %v1009_v46, %v625_v62  ;;  %v689_v5 = vmul.f32 %v1009_v46, %v627_v20  ;;  %v690_v6 = vmul.f32 %v1009_v46, %v628_v63 }
 0x126   :  { %747 = vst [vmem:[#allocation2 + $0x50] sm:$0xff] %v743_v43  ;;  %748 = vst [vmem:[#allocation2 + $0x58] sm:$0xff] %v744_v44  ;;  %v695_v8 = vmul.f32 %v1015_v49, %v968_v39  ;;  %v697_v10 = vmul.f32 %v1015_v49, %v974_v42  ;;  %v698_v11 = vmul.f32 %v1015_v49, %v972_v41 }
 0x127   :  { %v707_v13 = vmul.f32 %v1013_v48, %v678_v12  ;;  %v710_v15 = vmul.f32 %v1013_v48, %v681_v51  ;;  %v708_v17 = vmul.f32 %v1013_v48, %v679_v1  ;;  %v709_v46 = vmul.f32 %v1013_v48, %v680_v22 }
 0x128   :  { %v700_v24 = vadd.f32 %v696_v58, %v688_v3  ;;  %v699_v45 = vadd.f32 %v695_v8, %v687_v4  ;;  %v701_v40 = vadd.f32 %v697_v10, %v689_v5  ;;  %v702_v25 = vadd.f32 %v698_v11, %v690_v6 }
 0x12a   :  { %v712_v26 = vadd.f32 %v708_v17, %v700_v24  ;;  %v713_v39 = vadd.f32 %v709_v46, %v701_v40  ;;  %v714_v27 = vadd.f32 %v710_v15, %v702_v25  ;;  %v711_v28 = vadd.f32 %v707_v13, %v699_v45 }
 0x133   :  { %v719_v42 = vpop.permute.xlu0 %718 }
 0x134   :  { %v721_v14 = vadd.f32 %v719_v42, %v711_v28  ;;  %v722_v29 = vadd.f32 %v719_v42, %v712_v26  ;;  %v723_v41 = vadd.f32 %v719_v42, %v713_v39  ;;  %v724_v49 = vadd.f32 %v719_v42, %v714_v27 }
 0x136   :  { %v749_v47 = vmax.f32 %v721_v14, 0.0  ;;  %v750_v30 = vmax.f32 %v722_v29, 0.0  ;;  %v751_v31 = vmax.f32 %v723_v41, 0.0  ;;  %v752_v32 = vmax.f32 %v724_v49, 0.0 }
 0x138   :  { %753 = vst [vmem:[#allocation2 + $0x60] sm:$0xff] %v749_v47  ;;  %754 = vst [vmem:[#allocation2 + $0x68] sm:$0xff] %v750_v30 }
 0x139   :  { %755 = vst [vmem:[#allocation2 + $0x70] sm:$0xff] %v751_v31  ;;  %756 = vst [vmem:[#allocation2 + $0x78] sm:$0xff] %v752_v32 }
 0x169   :  { %v331_v48 = vpop.f32.mrb[0].mxu0  ;;  %v408_v19 = vpop.f32.mrb[0].mxu1 }
 0x16a   :  { %v332_v33 = vadd.f32 %v331_v48, %v1021_v53  ;;  %v333_v34 = vpop.f32.mrb[1].mxu0  ;;  %v409_v35 = vadd.f32 %v408_v19, %v1021_v53  ;;  %v410_v37 = vpop.f32.mrb[1].mxu1 }
 0x16b   :  { %v334_v36 = vadd.f32 %v333_v34, %v1021_v53  ;;  %v411_v38 = vadd.f32 %v410_v37, %v1021_v53 }
 0x16c   :  { %v725_v21 = vmax.f32 %v332_v33, 0.0  ;;  %v727_v43 = vmax.f32 %v409_v35, 0.0 }
 0x16d   :  { %v726_v44 = vmax.f32 %v334_v36, 0.0  ;;  %v337_v52 = vpop.f32.mrb[2].mxu0  ;;  %v728_v9 = vmax.f32 %v411_v38, 0.0  ;;  %v414_v56 = vpop.f32.mrb[2].mxu1 }
 0x16e   :  { %733 = vst [vmem:[#allocation2] sm:$0xff] %v725_v21  ;;  %v338_v23 = vadd.f32 %v337_v52, %v1017_v50  ;;  %v339_v18 = vpop.f32.mrb[3].mxu0  ;;  %735 = vst [vmem:[#allocation2 + $0x10] sm:$0xff] %v727_v43  ;;  %v415_v60 = vadd.f32 %v414_v56, %v1017_v50  ;;  %v416_v55 = vpop.f32.mrb[3].mxu1 }
 0x16f   :  { %734 = vst [vmem:[#allocation2 + $0x8] sm:$0xff] %v726_v44  ;;  %v340_v54 = vadd.f32 %v339_v18, %v1017_v50  ;;  %736 = vst [vmem:[#allocation2 + $0x18] sm:$0xff] %v728_v9  ;;  %v417_v57 = vadd.f32 %v416_v55, %v1017_v50 }
 0x170   :  { %v729_v53 = vmax.f32 %v338_v23, 0.0  ;;  %v731_v2 = vmax.f32 %v415_v60, 0.0 }
 0x171   :  { %v730_v59 = vmax.f32 %v340_v54, 0.0  ;;  %v732_v7 = vmax.f32 %v417_v57, 0.0 }
 0x172   :  { %737 = vst [vmem:[#allocation2 + $0x20] sm:$0xff] %v729_v53  ;;  %739 = vst [vmem:[#allocation2 + $0x30] sm:$0xff] %v731_v2 }
 0x173   :  { %738 = vst [vmem:[#allocation2 + $0x28] sm:$0xff] %v730_v59  ;;  %740 = vst [vmem:[#allocation2 + $0x38] sm:$0xff] %v732_v7 }
 0x174   :  { %810 = shalt.err (!%p807_p4)
}
 0x175   :  { %s811_s19 = scalar_lea.hbm %s1190_s10, 2048 }
 0x176   :  { %p812_p5 = scmp.ne.s32.totalorder %s1190_s10, %s811_s19  ;;  %p815_p6 = scmp.lt.u32.totalorder %s811_s19, %s1190_s10 }
 0x178   :  { %p817_p7 = pnand %p815_p6, %p812_p5 }
 0x17a   :  { %820 = shalt.err (!%p817_p7)
}
 0x17b   :  { %s833_s8 = smov 512   ;;  %s834_s22 = smov 32  }
 0x17c   :  { %768 = dma.vmem_to_hbm [thread:$0]  %s763_s16, 2048, %s1190_s10, [#allocation3], %s833_s8, %s833_s8, %s834_s22  }
 0x17d   :  { %821 = dma.done.wait [#allocation3], 2048  }
 0x17e   :  { %822 = vsyncadd [#allocation3], 4294965248 }
 0x17f   :  { %772 = vsyncpa [#allocation3], 1 }

</bundles_post_ra>
